<compile_context>
chip_gen: v6e
topology: v6e:2x2x1
jax: 0.10.0
libtpu: 0.0.40
codegen_flags: <defaults>
</compile_context>

<pallas_src>
import jax
import jax.numpy as jnp
from jax.experimental import pallas as pl
from jax.experimental.pallas import tpu as pltpu

# ImageNet normalization constants from Normalizer.__init__
_MEAN = jnp.array([0.485, 0.456, 0.406], dtype=jnp.float32)
_STD = jnp.array([0.229, 0.224, 0.225], dtype=jnp.float32)

_LANE = 128
_FAST_PATH_BYTES = 1 << 20  # below this, fused XLA elementwise beats a pallas_call


def _round_up(x, m):
    return ((x + m - 1) // m) * m


def _round_down(x, m):
    return (x // m) * m


def _hw_params():
    """Generation-aware per-buffer block budget / scoped-VMEM limit."""
    kind = ""
    try:
        kind = jax.devices()[0].device_kind.lower()
    except Exception:
        pass
    if "7" in kind:
        # v7x: 3.2 TB/s HBM, 2 TensorCores, 64 MiB physical VMEM.  Bigger
        # blocks amortize the ~0.35us per-grid-step overhead; >=4 grid blocks
        # keep both TensorCores busy ("parallel" grid axes).
        return {"block_budget": 8 << 20, "vmem_limit": 40 << 20, "min_blocks": 4}
    # v5e / v6e (and fallback): 4 MiB padded per streaming buffer -> ~16 MiB
    # steady state (in + out, double-buffered).  Raise the scoped-VMEM limit
    # above v5e's 16 MiB default so the intended tile size always compiles.
    return {"block_budget": 4 << 20, "vmem_limit": 32 << 20, "min_blocks": 1}


def _choose_tiles(R, L, sublane_mult, budget_bytes):
    """Pick (r_tile, l_tile) using *padded* f32 block bytes.

    A (r, l) f32 block occupies round_up(r, sub) x round_up(l, 128) x 4 bytes
    of VMEM; `sub` is the input's sublane granularity (8 for f32, 32 for 8-bit)
    so the same tile satisfies both the input and f32-output block rules.
    """
    sub = max(8, sublane_mult)
    item = 4  # f32 output dominates; the (optional) 8-bit input block is 4x smaller

    def pad_bytes(r, l):
        return _round_up(r, sub) * _round_up(l, _LANE) * item

    # Lane-dense bulk tile: multiples of 128; a ragged tail (L % 128 != 0)
    # is carried by the last lane-grid block instead of masking every row.
    if L <= _LANE or L % _LANE == 0:
        l_max = L
    else:
        l_max = _round_down(L, _LANE)

    # Rows: prefer the full R (= N*C, usually tiny).
    if pad_bytes(R, min(L, _LANE)) <= budget_bytes:
        r_tile = R
    else:
        rows_fit = budget_bytes // (_LANE * item)
        r_tile = max(sub, _round_down(rows_fit, sub))
        if R > sub:
            r_tile = min(r_tile, _round_down(R, sub))
        else:
            r_tile = R

    # Lanes: as many 128-lane groups as fit in the budget at this row tile.
    if L <= _LANE:
        l_tile = L
    else:
        lanes_fit = budget_bytes // (_round_up(r_tile, sub) * item)
        l_tile = min(l_max, max(_LANE, _round_down(lanes_fit, _LANE)))
    return r_tile, l_tile


def _normalizer_kernel(scale_ref, bias_ref, x_ref, o_ref):
    # scale_ref / bias_ref: (r_tile, 1) per-row constants, broadcast over lanes.
    # x_ref / o_ref:        (r_tile, l_tile) streaming tile.
    x = x_ref[...]
    if x.dtype == jnp.int8:
        # int8 view of uint8 image bytes: widen then zero the sign-extension.
        x = jnp.bitwise_and(x.astype(jnp.int32), 0xFF).astype(jnp.float32)
    else:
        x = x.astype(jnp.float32)
    o_ref[...] = x * scale_ref[...] + bias_ref[...]


def normalizer(x: jax.Array, *, force_pallas: bool = False) -> jax.Array:
    """Pallas equivalent of Normalizer.forward. x is NCHW (float or uint8)."""
    N, C, H, W = x.shape
    R, L = N * C, H * W

    # Per-(n, c) fused scale/bias tables.  Only n == 0 and c < 3 get the
    # ImageNet normalization, exactly like the PyTorch in-place loop; all
    # other rows just see the /255 (scale = 1/255, bias = 0).
    nch = min(C, 3)
    mean_tab = jnp.zeros((N, C), dtype=jnp.float32).at[0, :nch].set(_MEAN[:nch])
    std_tab = jnp.ones((N, C), dtype=jnp.float32).at[0, :nch].set(_STD[:nch])
    scale = (1.0 / (255.0 * std_tab)).reshape(R, 1)
    bias = (-mean_tab / std_tab).reshape(R, 1)

    # Small-tensor fast path: launch + per-step overhead dwarfs the work.
    if (R * L * 4 < _FAST_PATH_BYTES) and not force_pallas:
        xf = x.astype(jnp.float32)
        return xf * scale.reshape(N, C, 1, 1) + bias.reshape(N, C, 1, 1)

    x2 = x.reshape(R, L)
    if x2.dtype == jnp.uint8:
        # Feed raw image bytes to the kernel (1 B/elem HBM read); int8 view
        # keeps all in-kernel converts signed (widen + mask in the body).
        x2 = jax.lax.bitcast_convert_type(x2, jnp.int8)
        in_sub = 32  # 8-bit blocks: (32, 128) granularity (or full dim)
    elif x2.dtype == jnp.int8:
        in_sub = 32  # treated as uint8 image bytes (see kernel body)
    else:
        x2 = x2.astype(jnp.float32)
        in_sub = 8

    hw = _hw_params()
    budget = hw["block_budget"]
    if hw["min_blocks"] > 1:
        # Guarantee enough "parallel" grid blocks to feed both v7x TensorCores.
        total_padded = _round_up(R, in_sub) * _round_up(L, _LANE) * 4
        budget = min(budget, max(total_padded // hw["min_blocks"], 2 << 20))

    r_tile, l_tile = _choose_tiles(R, L, in_sub, budget)
    grid = (pl.cdiv(R, r_tile), pl.cdiv(L, l_tile))

    out2 = pl.pallas_call(
        _normalizer_kernel,
        out_shape=jax.ShapeDtypeStruct((R, L), jnp.float32),
        grid_spec=pltpu.PrefetchScalarGridSpec(
            num_scalar_prefetch=0,
            grid=grid,
            in_specs=[
                # Lane axis (j) is the innermost grid dim, so these tiny
                # per-row-block constants are not re-DMA'd across j.
                pl.BlockSpec((r_tile, 1), lambda i, j: (i, 0)),
                pl.BlockSpec((r_tile, 1), lambda i, j: (i, 0)),
                pl.BlockSpec((r_tile, l_tile), lambda i, j: (i, j)),
            ],
            out_specs=pl.BlockSpec((r_tile, l_tile), lambda i, j: (i, j)),
        ),
        compiler_params=pltpu.CompilerParams(
            dimension_semantics=("parallel", "parallel"),
            vmem_limit_bytes=hw["vmem_limit"],
        ),
    )(scale, bias, x2)

    return out2.reshape(N, C, H, W)


def _reference(x: jax.Array) -> jax.Array:
    # Pure-JAX reference reproducing the PyTorch in-place loop.
    t = x.astype(jnp.float32) / 255.0
    nch = min(x.shape[1], 3)
    for i in range(nch):
        t = t.at[0, i].set((t[0, i] - _MEAN[i]) / _STD[i])
    return t


if __name__ == "__main__":
    key = jax.random.PRNGKey(0)
    k1, k2 = jax.random.split(key)

    # 1) float32 input forced through the Pallas kernel (small NCHW batch).
    x_f32 = jax.random.uniform(k1, (2, 4, 16, 16), dtype=jnp.float32) * 255.0
    out = jax.block_until_ready(normalizer(x_f32, force_pallas=True))
    ref = _reference(x_f32)
    assert out.shape == ref.shape and out.dtype == ref.dtype
    assert jnp.allclose(out, ref, atol=1e-5, rtol=1e-5), "f32 kernel mismatch"

    # 2) Small-tensor fast path (plain fused XLA elementwise).
    out_fast = jax.block_until_ready(normalizer(x_f32))
    assert jnp.allclose(out_fast, ref, atol=1e-5, rtol=1e-5), "fast-path mismatch"

    # 3) uint8 image input: widening happens inside the kernel (1 B/elem read).
    x_u8 = jax.random.randint(k2, (2, 4, 16, 16), 0, 256, dtype=jnp.int32).astype(jnp.uint8)
    out_u8 = jax.block_until_ready(normalizer(x_u8, force_pallas=True))
    ref_u8 = _reference(x_u8)
    assert out_u8.dtype == jnp.float32
    assert jnp.allclose(out_u8, ref_u8, atol=1e-5, rtol=1e-5), "uint8 kernel mismatch"

    # 4) Ragged lane tail (H*W not a multiple of 128) + full-dim (R=3) row block.
    x_odd = jax.random.uniform(key, (1, 3, 72, 100), dtype=jnp.float32) * 255.0
    out_odd = jax.block_until_ready(normalizer(x_odd, force_pallas=True))
    assert jnp.allclose(out_odd, _reference(x_odd), atol=1e-5, rtol=1e-5), "ragged mismatch"

    print("KERNEL_OK")
</pallas_src>

<mosaic_0001>
module attributes {stable_mosaic.version = 11 : i64} {
  func.func @_normalizer_kernel(%arg0: i32, %arg1: i32, %arg2: memref<8x1xf32, #tpu.memory_space<vmem>>, %arg3: memref<8x1xf32, #tpu.memory_space<vmem>>, %arg4: memref<8x256xf32, #tpu.memory_space<vmem>>, %arg5: memref<8x256xf32, #tpu.memory_space<vmem>>) attributes {dimension_semantics = [#tpu.dimension_semantics<parallel>, #tpu.dimension_semantics<parallel>], iteration_bounds = array<i64: 1, 1>, scalar_prefetch = 0 : i64, scratch_operands = 0 : i64, tpu.core_type = #tpu.core_type<tc>, window_params = [{transform_indices = @transform_0, window_bounds = array<i64: 8, 1>}, {transform_indices = @transform_1, window_bounds = array<i64: 8, 1>}, {transform_indices = @transform_2, window_bounds = array<i64: 8, 256>}, {transform_indices = @transform_3, window_bounds = array<i64: 8, 256>}]} {
    %c0 = arith.constant 0 : index
    %c0_0 = arith.constant 0 : index
    %0 = vector.load %arg4[%c0, %c0_0] : memref<8x256xf32, #tpu.memory_space<vmem>>, vector<8x256xf32>
    %c0_1 = arith.constant 0 : index
    %c0_2 = arith.constant 0 : index
    %1 = vector.load %arg2[%c0_1, %c0_2] : memref<8x1xf32, #tpu.memory_space<vmem>>, vector<8x1xf32>
    %2 = vector.broadcast %1 : vector<8x1xf32> to vector<8x256xf32>
    %3 = arith.mulf %0, %2 : vector<8x256xf32>
    %c0_3 = arith.constant 0 : index
    %c0_4 = arith.constant 0 : index
    %4 = vector.load %arg3[%c0_3, %c0_4] : memref<8x1xf32, #tpu.memory_space<vmem>>, vector<8x1xf32>
    %5 = vector.broadcast %4 : vector<8x1xf32> to vector<8x256xf32>
    %6 = arith.addf %3, %5 : vector<8x256xf32>
    %c0_5 = arith.constant 0 : index
    %c0_6 = arith.constant 0 : index
    %7 = vector.load %arg5[%c0_5, %c0_6] : memref<8x256xf32, #tpu.memory_space<vmem>>, vector<8x256xf32>
    tpu.vector_store %arg5[%c0_5, %c0_6], %6 {strides = array<i32>} : memref<8x256xf32, #tpu.memory_space<vmem>>, vector<8x256xf32>,
    return
  }
  func.func @transform_0(%arg0: i32, %arg1: i32) -> (i32, i32) {
    %c0_i32 = arith.constant 0 : i32
    %c0_i32_0 = arith.constant 0 : i32
    return %arg0, %c0_i32 : i32, i32
  }
  func.func @transform_1(%arg0: i32, %arg1: i32) -> (i32, i32) {
    %c0_i32 = arith.constant 0 : i32
    %c0_i32_0 = arith.constant 0 : i32
    return %arg0, %c0_i32 : i32, i32
  }
  func.func @transform_2(%arg0: i32, %arg1: i32) -> (i32, i32) {
    %c0_i32 = arith.constant 0 : i32
    return %arg0, %arg1 : i32, i32
  }
  func.func @transform_3(%arg0: i32, %arg1: i32) -> (i32, i32) {
    %c0_i32 = arith.constant 0 : i32
    return %arg0, %arg1 : i32, i32
  }
}

</mosaic_0001>

<bundles_post_ra>
// kernel: tpu_custom_call.1
= control target key start
LH: loop header
LB: loop body
LE: loop exit
PB: predicated region body
PF: predicated region fallthrough
CT: control target
= control target key end

     0   :  { %v74_v1 = vmov 0   ;;  %s111_s0 = inlined_call_operand.vmem [shape: f32[8,1], index: 0, kind: input, shape index: {}]   ;;  %s112_s1 = inlined_call_operand.vmem [shape: f32[8,1], index: 1, kind: input, shape index: {}]   ;;  %s113_s2 = inlined_call_operand.vmem [shape: f32[8,256], index: 2, kind: input, shape index: {}]   ;;  %s114_s3 = inlined_call_operand.hbm [shape: f32[8,256], index: 3, kind: output, shape index: {}]  }
   0x1   :  { %v17_v0 = vld [vmem:[%s111_s0] sm:$0xff]  ;;  %51 = vset.pattern.permute.xlu0 %v74_v1 }
   0x2   :  { %8 = vsyncpa [#allocation3], 0  ;;  %20 = vperm.xlu0 %51, %v17_v0   ;;  %v25_v2 = vld [vmem:[%s112_s1] sm:$0xff]  ;;  %v16_v5 = vld [vmem:[%s113_s2 + $0x8] sm:$0xff]  ;;  %s75_s20 = smov [#allocation2]  }
   0x3   :  { %v15_v4 = vld [vmem:[%s113_s2] sm:$0xff]  ;;  %s41_s0 = sshll.u32 %s75_s20, 4  ;;  %s42_s0 = int_to_ptr.vmem [resolvable:$true] %s41_s0 }
   0x4   :  { %s52_s1 = scalar_lea.vmem %s42_s0, 256  ;;  %p57_p1 = scmp.lt.s32.totalorder %s42_s0, %s42_s0 }
   0x5   :  { %p53_p0 = scmp.ne.s32.totalorder %s42_s0, %s52_s1  ;;  %p58_p2 = scmp.lt.s32.totalorder %s52_s1, %s52_s1 }
   0x6   :  { %28 = vperm.xlu0 %51, %v25_v2  }
   0x7   :  { %p59_p3 = por %p58_p2, %p57_p1 }
   0x9   :  { %p60_p4 = pnand %p59_p3, %p53_p0 }
  0x7d   :  { %v21_v3 = vpop.permute.xlu0 %20 }
  0x7e   :  { %v23_v6 = vmul.f32 %v21_v3, %v15_v4  ;;  %v24_v7 = vmul.f32 %v21_v3, %v16_v5 }
  0x81   :  { %v29_v8 = vpop.permute.xlu0 %28 }
  0x82   :  { %v31_v9 = vadd.f32 %v29_v8, %v23_v6  ;;  %v32_v10 = vadd.f32 %v29_v8, %v24_v7 }
  0x84   :  { %33 = vst [vmem:[#allocation2] sm:$0xff] %v31_v9  ;;  %34 = vst [vmem:[#allocation2 + $0x8] sm:$0xff] %v32_v10 }
  0x85   :  { %63 = shalt.err (!%p60_p4)
}
  0x86   :  { %44 = dma.vmem_to_hbm [thread:$0]  %s42_s0, 256, %s114_s3, [#allocation3]  }
  0x87   :  { %72 = dma.done.wait [#allocation3], 256  }
  0x88   :  { %73 = vsyncadd [#allocation3], 4294967040 }
  0x89   :  { %48 = vsyncpa [#allocation3], 1 }

</bundles_post_ra>
